<compile_context>
chip_gen: v7x
topology: tpu7x:2x2x1
jax: 0.10.0
libtpu: 0.0.40
codegen_flags: <defaults>
</compile_context>

<pallas_src>
import functools

import jax
import jax.numpy as jnp
from jax.experimental import pallas as pl
from jax.experimental.pallas import tpu as pltpu


def _round_up(x, m):
    return (x + m - 1) // m * m


def _vmem_capacity_bytes():
    """Physical VMEM per TensorCore; conservative v7x default if the query fails."""
    try:
        return int(pltpu.get_tpu_info().vmem_capacity_bytes)
    except Exception:
        return 64 * 1024 * 1024


# ----------------------------------------------------------------------------
# FUSED PATH: whole encoder in one kernel, A VMEM-resident across all layers.
# ----------------------------------------------------------------------------
def _fused_encoder_kernel(alpha_ref,   # SMEM (L, 1)            PReLU weights
                          a_ref,       # VMEM (N_pad, N_pad)    bf16 normalized adjacency
                          m0_ref,      # VMEM (N_pad, K0)       bf16 (X   or  X@W0)
                          w0_ref,      # VMEM (K0, F1) bf16     W0 (dummy if pre-applied)
                          wst_ref,     # VMEM (max(L-1,1), Fh, Fh) bf16 stacked W_l, l>=1
                          b_ref,       # VMEM (L, 1, Fh) f32    GCN biases
                          g_ref,       # VMEM (L, 1, Fh) f32    BN weights
                          be_ref,      # VMEM (L, 1, Fh) f32    BN biases
                          o_ref,       # VMEM (N_pad, F_last) f32
                          *, in_pads, out_pads, apply_w0, n_valid):
    num_layers = len(out_pads)
    n_pad = a_ref.shape[0]

    a = a_ref[...]                                              # load A once, reuse per layer
    rows = jax.lax.broadcasted_iota(jnp.int32, (n_pad, 1), 0)
    maskf = (rows < n_valid).astype(jnp.float32)                # mask padded rows for BN stats
    inv_n = 1.0 / n_valid

    cur = m0_ref[...]
    for l in range(num_layers):                                 # static unroll (L is small)
        kin, kout = in_pads[l], out_pads[l]

        # ---- GCNConv: A @ X @ W with the cheaper (padded-dim) ordering (MXU, f32 acc) ----
        if l == 0:
            t = jnp.dot(a, cur, preferred_element_type=jnp.float32)
            if apply_w0:                                        # (A @ X) @ W0
                h = jnp.dot(t.astype(jnp.bfloat16), w0_ref[...],
                            preferred_element_type=jnp.float32)
            else:                                               # X@W0 pre-applied in XLA
                h = t
        else:
            wl = wst_ref[l - 1, :kin, :kout]
            if kin <= kout:                                     # (A @ X) @ W
                t = jnp.dot(a, cur, preferred_element_type=jnp.float32)
                h = jnp.dot(t.astype(jnp.bfloat16), wl,
                            preferred_element_type=jnp.float32)
            else:                                               # A @ (X @ W)
                t = jnp.dot(cur, wl, preferred_element_type=jnp.float32)
                h = jnp.dot(a, t.astype(jnp.bfloat16),
                            preferred_element_type=jnp.float32)
        h = h + b_ref[l, :, :kout]

        # ---- BatchNorm1d (training-mode batch stats; padded rows masked out) ----
        hm = h * maskf
        s = jnp.sum(hm, axis=0, keepdims=True)
        sq = jnp.sum(hm * hm, axis=0, keepdims=True)
        mean = s * inv_n
        # NOTE: E[x^2]-E[x]^2 in f32, clamped against cancellation-induced negatives.
        var = jnp.maximum(sq * inv_n - mean * mean, 0.0)
        scale = g_ref[l, :, :kout] * jax.lax.rsqrt(var + 1e-5)
        shift = be_ref[l, :, :kout] - mean * scale
        hn = h * scale + shift

        # ---- PReLU ----
        alpha = alpha_ref[l, 0]
        act = jnp.where(hn > 0, hn, alpha * hn)

        if l == num_layers - 1:
            o_ref[...] = act
        else:
            cur = act.astype(jnp.bfloat16)


def _encoder_fused(params, x, a_pad_bf16, *, n_valid, vmem_cap):
    """All encoder layers fused in one pallas_call; A is loaded into VMEM once."""
    n_pad = a_pad_bf16.shape[0]
    num_layers = len(params)
    c = [x.shape[1]] + [w.shape[1] for (w, _, _, _, _) in params]
    pads = [_round_up(d, 128) for d in c]
    fh_pad = max(pads[1:])

    # Layer-0 operand: cheaper padded-dim ordering; if dims pad equal, pre-apply X@W0 in
    # XLA so the kernel skips the second matmul for layer 0 entirely.
    apply_w0 = pads[0] < pads[1]
    x_pad = jnp.zeros((n_pad, pads[0]), jnp.float32).at[:n_valid, :c[0]].set(
        x.astype(jnp.float32))
    w0 = params[0][0]
    w0_pad = jnp.zeros((pads[0], pads[1]), jnp.float32).at[:c[0], :c[1]].set(w0)
    if apply_w0:
        m0 = x_pad.astype(jnp.bfloat16)
        w0_in = w0_pad.astype(jnp.bfloat16)
        k0_pad = pads[0]
    else:
        m0 = jnp.dot(x_pad, w0_pad,
                     preferred_element_type=jnp.float32).astype(jnp.bfloat16)
        w0_in = jnp.zeros((8, 128), jnp.bfloat16)               # unused dummy
        k0_pad = pads[1]

    # Stacked per-layer parameters, zero-padded to a common lane-dense width.
    wst = jnp.zeros((max(num_layers - 1, 1), fh_pad, fh_pad), jnp.bfloat16)
    for l in range(1, num_layers):
        w_l = params[l][0]
        wst = wst.at[l - 1, :w_l.shape[0], :w_l.shape[1]].set(w_l.astype(jnp.bfloat16))
    b_st = jnp.zeros((num_layers, 1, fh_pad), jnp.float32)
    g_st = jnp.zeros((num_layers, 1, fh_pad), jnp.float32)
    be_st = jnp.zeros((num_layers, 1, fh_pad), jnp.float32)
    for l, (_, b, gamma, beta, _) in enumerate(params):
        f_out = b.shape[0]
        b_st = b_st.at[l, 0, :f_out].set(b)
        g_st = g_st.at[l, 0, :f_out].set(gamma)
        be_st = be_st.at[l, 0, :f_out].set(beta)
    alpha_st = jnp.concatenate([p[4].reshape(1) for p in params]
                               ).reshape(num_layers, 1).astype(jnp.float32)

    in_pads = tuple([k0_pad] + pads[1:-1])
    out_pads = tuple(pads[1:])

    kernel = functools.partial(_fused_encoder_kernel, in_pads=in_pads,
                               out_pads=out_pads, apply_w0=apply_w0, n_valid=n_valid)

    flops = 0
    for l in range(num_layers):
        kin, kout = in_pads[l], out_pads[l]
        if l == 0 and not apply_w0:
            flops += 2 * n_pad * n_pad * kout
        else:
            flops += 2 * n_pad * n_pad * min(kin, kout) + 2 * n_pad * kin * kout
    bytes_accessed = (a_pad_bf16.size * 2 + m0.size * 2 + wst.size * 2
                      + 3 * num_layers * fh_pad * 4 + n_pad * out_pads[-1] * 4)
    cost = pl.CostEstimate(flops=int(flops), transcendentals=int(num_layers * fh_pad),
                           bytes_accessed=int(bytes_accessed))

    vmem_spec = pl.BlockSpec(memory_space=pltpu.MemorySpace.VMEM)
    smem_spec = pl.BlockSpec(memory_space=pltpu.MemorySpace.SMEM)

    return pl.pallas_call(
        kernel,
        out_shape=jax.ShapeDtypeStruct((n_pad, out_pads[-1]), jnp.float32),
        in_specs=[smem_spec, vmem_spec, vmem_spec, vmem_spec, vmem_spec,
                  vmem_spec, vmem_spec, vmem_spec],
        out_specs=vmem_spec,
        compiler_params=pltpu.CompilerParams(vmem_limit_bytes=int(vmem_cap * 0.9)),
        cost_estimate=cost,
    )(alpha_st, a_pad_bf16, m0, w0_in, wst, b_st, g_st, be_st)


# ----------------------------------------------------------------------------
# STREAMING PATH: per-layer two-phase kernel (A streamed as bf16 row tiles).
# ----------------------------------------------------------------------------
def _choose_tm(n, fh_pad, vmem_cap):
    """Row-tile size: as large as possible (fewer grid steps, bigger DMAs), shrunk so the
    double-buffered bf16 A row tiles + per-layer residents fit this generation's VMEM."""
    if n <= 1024:
        return _round_up(n, 16)                      # bf16 sublane packing: 16 rows / vreg
    n_pad_est = _round_up(n, 256)
    resident = n_pad_est * fh_pad * (2 + 4) + (4 << 20)   # m (bf16) + h_scr (f32) + misc
    budget = max(int(vmem_cap * 0.75) - resident, 8 << 20)
    tm = 1024
    while tm > 128 and (2 * tm * _round_up(n, tm) * 2 + 2 * tm * fh_pad * 4) > budget:
        tm //= 2
    return tm


def _encoder_layer_kernel(alpha_ref,   # SMEM (1,1)   PReLU weight
                          a_ref,       # VMEM (TM, N_pad) bf16 adjacency row tile
                          m_ref,       # VMEM (N_pad, K_pad) bf16 (X or X@W)
                          w2_ref,      # VMEM (Fin_pad, Fout_pad) bf16
                          b_ref,       # VMEM (1, Fout_pad) f32
                          gamma_ref,   # VMEM (1, Fout_pad) f32
                          beta_ref,    # VMEM (1, Fout_pad) f32
                          o_ref,       # VMEM (TM, Fout_pad) f32
                          h_scr,       # VMEM (N_pad, Fout_pad) f32 pre-BN activations
                          sum_scr, sq_scr, scale_scr, shift_scr,   # VMEM (1, Fout_pad) f32
                          *, apply_w2, tm, n_valid, n_pad):
    p = pl.program_id(0)          # 0: matmul + stats, 1: BN + PReLU + store
    i = pl.program_id(1)          # row-tile index
    last = pl.num_programs(1) - 1
    start = pl.multiple_of(i * tm, tm)

    @pl.when(p == 0)
    def _compute_and_accumulate():
        @pl.when(i == 0)
        def _init():
            sum_scr[...] = jnp.zeros_like(sum_scr)
            sq_scr[...] = jnp.zeros_like(sq_scr)
            # Phase 0 pins output block 0: give it defined contents in case the pipeline
            # ever writes it back before phase 1 overwrites it.
            o_ref[...] = jnp.zeros_like(o_ref)

        h = jnp.dot(a_ref[...], m_ref[...], preferred_element_type=jnp.float32)
        if apply_w2:                                  # (A @ X) @ W  (f_in_pad < f_out_pad)
            h = jnp.dot(h.astype(w2_ref.dtype), w2_ref[...],
                        preferred_element_type=jnp.float32)
        h = h + b_ref[...]
        h_scr[pl.ds(start, tm), :] = h

        if n_valid == n_pad:                          # no padded rows at all (static)
            sum_scr[...] += jnp.sum(h, axis=0, keepdims=True)
            sq_scr[...] += jnp.sum(h * h, axis=0, keepdims=True)
        else:
            @pl.when(i != last)                       # full tiles: unmasked sums
            def _full():
                sum_scr[...] += jnp.sum(h, axis=0, keepdims=True)
                sq_scr[...] += jnp.sum(h * h, axis=0, keepdims=True)

            @pl.when(i == last)                       # only the last tile has padding
            def _masked():
                row = start + jax.lax.broadcasted_iota(jnp.int32, (tm, 1), 0)
                hv = h * (row < n_valid).astype(jnp.float32)
                sum_scr[...] += jnp.sum(hv, axis=0, keepdims=True)
                sq_scr[...] += jnp.sum(hv * hv, axis=0, keepdims=True)

    @pl.when(p == 1)
    def _normalize_and_activate():
        @pl.when(i == 0)
        def _hoist_bn_affine():                       # scale/shift computed once per layer
            inv_n = 1.0 / n_valid
            mean = sum_scr[...] * inv_n
            var = jnp.maximum(sq_scr[...] * inv_n - mean * mean, 0.0)
            scale = gamma_ref[...] * jax.lax.rsqrt(var + 1e-5)
            scale_scr[...] = scale
            shift_scr[...] = beta_ref[...] - mean * scale

        h = h_scr[pl.ds(start, tm), :]
        hn = h * scale_scr[...] + shift_scr[...]
        alpha = alpha_ref[0, 0]
        o_ref[...] = jnp.where(hn > 0, hn, alpha * hn)


def gcn_bn_prelu_layer(a_pad_bf16, x_pad, w, b, gamma, beta, alpha,
                       *, n_valid, tm, vmem_cap):
    """One Encoder layer (streaming path): GCNConv -> BatchNorm1d(train) -> PReLU."""
    n_pad = a_pad_bf16.shape[0]
    n_tiles = n_pad // tm
    f_in, f_out = w.shape
    f_in_pad = _round_up(f_in, 128)
    f_out_pad = _round_up(f_out, 128)

    w_pad = jnp.zeros((f_in_pad, f_out_pad), jnp.float32).at[:f_in, :f_out].set(w)
    b_pad = jnp.zeros((1, f_out_pad), jnp.float32).at[0, :f_out].set(b)
    g_pad = jnp.zeros((1, f_out_pad), jnp.float32).at[0, :f_out].set(gamma)
    be_pad = jnp.zeros((1, f_out_pad), jnp.float32).at[0, :f_out].set(beta)

    # Ordering decided on PADDED dims; if equal (or Fout smaller), pre-apply X@W in XLA
    # so the kernel runs a single matmul per tile.
    apply_w2 = f_in_pad < f_out_pad
    if apply_w2:
        m = x_pad.astype(jnp.bfloat16)                        # kernel does (A@X)@W
        k_pad = f_in_pad
    else:
        m = jnp.dot(x_pad, w_pad,
                    preferred_element_type=jnp.float32).astype(jnp.bfloat16)
        k_pad = f_out_pad
    w2 = w_pad.astype(jnp.bfloat16)

    kernel = functools.partial(_encoder_layer_kernel, apply_w2=apply_w2, tm=tm,
                               n_valid=n_valid, n_pad=n_pad)

    last = n_tiles - 1
    single = pl.Buffered(1)                     # grid-invariant operands: no double buffer
    alpha_spec = pl.BlockSpec((1, 1), lambda p, i: (0, 0),
                              memory_space=pltpu.MemorySpace.SMEM)
    # Phase 0 streams A row tiles; phase 1 pins the last tile (no re-DMA).
    a_spec = pl.BlockSpec((tm, n_pad), lambda p, i: (i * (1 - p) + last * p, 0))
    m_spec = pl.BlockSpec((n_pad, k_pad), lambda p, i: (0, 0), pipeline_mode=single)
    w2_spec = pl.BlockSpec((f_in_pad, f_out_pad), lambda p, i: (0, 0),
                           pipeline_mode=single)
    vec_spec = pl.BlockSpec((1, f_out_pad), lambda p, i: (0, 0), pipeline_mode=single)
    # Output tiles only written in phase 1 (phase 0 pins + zero-fills block 0).
    out_spec = pl.BlockSpec((tm, f_out_pad), lambda p, i: (i * p, 0))

    flops = 2 * n_pad * n_pad * k_pad
    if apply_w2:
        flops += 2 * n_pad * k_pad * f_out_pad
    bytes_accessed = (a_pad_bf16.size * 2 + m.size * 2 + w2.size * 2
                      + 3 * f_out_pad * 4 + n_pad * f_out_pad * 4)
    cost = pl.CostEstimate(flops=int(flops), transcendentals=int(f_out_pad),
                           bytes_accessed=int(bytes_accessed))

    vmem_bytes = (2 * tm * n_pad * 2          # A row tiles (double-buffered)
                  + n_pad * k_pad * 2         # m (single-buffered)
                  + f_in_pad * f_out_pad * 2  # W
                  + 2 * tm * f_out_pad * 4    # output double buffer
                  + n_pad * f_out_pad * 4     # H scratch
                  + 16 * f_out_pad * 4)       # bias/gamma/beta/stats/affine
    vmem_limit = int(min(max(int(1.5 * vmem_bytes), 32 * 1024 * 1024),
                         int(vmem_cap * 0.9)))

    return pl.pallas_call(
        kernel,
        grid=(2, n_tiles),
        in_specs=[alpha_spec, a_spec, m_spec, w2_spec, vec_spec, vec_spec, vec_spec],
        out_specs=out_spec,
        out_shape=jax.ShapeDtypeStruct((n_pad, f_out_pad), jnp.float32),
        scratch_shapes=[pltpu.VMEM((n_pad, f_out_pad), jnp.float32),
                        pltpu.VMEM((1, f_out_pad), jnp.float32),
                        pltpu.VMEM((1, f_out_pad), jnp.float32),
                        pltpu.VMEM((1, f_out_pad), jnp.float32),
                        pltpu.VMEM((1, f_out_pad), jnp.float32)],
        compiler_params=pltpu.CompilerParams(
            dimension_semantics=("arbitrary", "arbitrary"),
            vmem_limit_bytes=vmem_limit),
        cost_estimate=cost,
    )(alpha.reshape(1, 1), a_pad_bf16, m, w2, b_pad, g_pad, be_pad)


# ----------------------------------------------------------------------------
# Glue: GCN-normalized dense adjacency from edge_index / edge_weight
# (matches torch_geometric GCNConv normalization with add_self_loops=True).
# ----------------------------------------------------------------------------
def gcn_norm_dense(edge_index, num_nodes, edge_weight=None):
    src, dst = edge_index[0], edge_index[1]
    if edge_weight is None:
        edge_weight = jnp.ones(src.shape[0], dtype=jnp.float32)
    adj = jnp.zeros((num_nodes, num_nodes), dtype=jnp.float32)
    # Messages flow source j -> target i (row i <- col j).
    adj = adj.at[dst, src].add(edge_weight)
    adj = adj + jnp.eye(num_nodes, dtype=jnp.float32)          # self loops
    deg = jnp.sum(adj, axis=1)
    dinv = jnp.where(deg > 0, jax.lax.rsqrt(deg), 0.0)
    return dinv[:, None] * adj * dinv[None, :]


# ----------------------------------------------------------------------------
# Encoder: stacked (GCNConv -> BatchNorm1d -> PReLU) layers
# ----------------------------------------------------------------------------
def init_encoder_params(key, layer_config):
    params = []
    for i in range(1, len(layer_config)):
        f_in, f_out = layer_config[i - 1], layer_config[i]
        key, kw = jax.random.split(key)
        limit = (6.0 / (f_in + f_out)) ** 0.5                  # glorot-style init
        w = jax.random.uniform(kw, (f_in, f_out), jnp.float32, -limit, limit)
        b = jnp.zeros((f_out,), jnp.float32)
        gamma = jnp.ones((f_out,), jnp.float32)                # BN weight
        beta = jnp.zeros((f_out,), jnp.float32)                # BN bias
        alpha = jnp.full((1,), 0.25, jnp.float32)              # PReLU default
        params.append((w, b, gamma, beta, alpha))
    return params


def encoder_forward(params, x, edge_index, edge_weight=None):
    n = x.shape[0]
    num_layers = len(params)
    c = [x.shape[1]] + [w.shape[1] for (w, _, _, _, _) in params]
    pads = [_round_up(d, 128) for d in c]
    fh_pad = max(pads[1:])
    vmem_cap = _vmem_capacity_bytes()

    a = gcn_norm_dense(edge_index, n, edge_weight)

    # ---- fused path: keep A VMEM-resident across all layers whenever it fits ----
    n_pad_f = _round_up(n, 128)
    a_bytes = 2 * n_pad_f * n_pad_f                        # one bf16 copy of A
    fused_need = (2 * a_bytes                              # slack for a possible compiler copy
                  + 10 * n_pad_f * fh_pad * 4              # per-layer f32/bf16 temporaries
                  + max(num_layers - 1, 1) * fh_pad * fh_pad * 2
                  + 4 * 1024 * 1024)                       # params / misc headroom
    if fused_need <= int(vmem_cap * 0.8):
        a_pad = (jnp.zeros((n_pad_f, n_pad_f), jnp.bfloat16)
                 .at[:n, :n].set(a.astype(jnp.bfloat16)))  # built directly in bf16
        out = _encoder_fused(params, x, a_pad, n_valid=n, vmem_cap=vmem_cap)
        return out[:n, :c[-1]]

    # ---- streaming fallback: per-layer two-phase kernel, A streamed as row tiles ----
    tm = _choose_tm(n, fh_pad, vmem_cap)
    n_pad = _round_up(n, tm)
    a_pad = (jnp.zeros((n_pad, n_pad), jnp.bfloat16)
             .at[:n, :n].set(a.astype(jnp.bfloat16)))
    h = jnp.zeros((n_pad, pads[0]), jnp.float32).at[:n, :c[0]].set(x.astype(jnp.float32))
    for (w, b, gamma, beta, alpha) in params:
        h = gcn_bn_prelu_layer(a_pad, h, w, b, gamma, beta, alpha,
                               n_valid=n, tm=tm, vmem_cap=vmem_cap)
    return h[:n, :c[-1]]


# ----------------------------------------------------------------------------
if __name__ == "__main__":
    key = jax.random.PRNGKey(0)

    # Small synthetic graph: 32 nodes, 16 input features, layers [16, 32, 8].
    layer_config = [16, 32, 8]
    num_nodes = 32
    num_edges = 64

    k_x, k_src, k_dst, k_p = jax.random.split(key, 4)
    x = jax.random.normal(k_x, (num_nodes, layer_config[0]), jnp.float32)
    src = jax.random.randint(k_src, (num_edges,), 0, num_nodes)
    dst = jax.random.randint(k_dst, (num_edges,), 0, num_nodes)
    edge_index = jnp.stack([src, dst], axis=0)

    params = init_encoder_params(k_p, layer_config)

    out = jax.jit(functools.partial(encoder_forward, params))(x, edge_index)
    out = jax.block_until_ready(out)

    assert out.shape == (num_nodes, layer_config[-1])
    assert bool(jnp.all(jnp.isfinite(out)))
    print("KERNEL_OK")
</pallas_src>

<mosaic_0001>
module attributes {stable_mosaic.version = 11 : i64} {
  func.func private @main(%arg0: i32) attributes {dimension_semantics = [#tpu.dimension_semantics<core_parallel>], iteration_bounds = array<i64: 2>, tpu.core_type = #tpu.core_type<sc_scalar_subcore>, window_params = []} {
    return
  }
}

module attributes {stable_mosaic.version = 11 : i64} {
  func.func private @main(%arg0: i32) attributes {dimension_semantics = [#tpu.dimension_semantics<core_parallel>], iteration_bounds = array<i64: 2>, tpu.core_type = #tpu.core_type<sc_scalar_subcore>, window_params = []} {
    return
  }
}

module attributes {stable_mosaic.version = 11 : i64} {
  func.func @_fused_encoder_kernel(%arg0: memref<2x1xf32, #tpu.memory_space<smem>>, %arg1: memref<128x128xbf16, #tpu.memory_space<vmem>>, %arg2: memref<128x128xbf16, #tpu.memory_space<vmem>>, %arg3: memref<8x128xbf16, #tpu.memory_space<vmem>>, %arg4: memref<1x128x128xbf16, #tpu.memory_space<vmem>>, %arg5: memref<2x1x128xf32, #tpu.memory_space<vmem>>, %arg6: memref<2x1x128xf32, #tpu.memory_space<vmem>>, %arg7: memref<2x1x128xf32, #tpu.memory_space<vmem>>, %arg8: memref<128x128xf32, #tpu.memory_space<vmem>>) attributes {dimension_semantics = [], scalar_prefetch = 0 : i64, scratch_operands = 0 : i64, tpu.core_type = #tpu.core_type<tc>} {
    %c0 = arith.constant 0 : index
    %c0_0 = arith.constant 0 : index
    %0 = vector.load %arg1[%c0, %c0_0] : memref<128x128xbf16, #tpu.memory_space<vmem>>, vector<128x128xbf16>
    %1 = tpu.iota {dimensions = array<i32: 0>} : vector<128x1xi32>
    %c32_i32 = arith.constant 32 : i32
    %2 = vector.broadcast %c32_i32 : i32 to vector<128x1xi32>
    %3 = arith.cmpi slt, %1, %2 : vector<128x1xi32>
    %4 = arith.extui %3 : vector<128x1xi1> to vector<128x1xi32>
    %5 = arith.sitofp %4 : vector<128x1xi32> to vector<128x1xf32>
    %c0_1 = arith.constant 0 : index
    %c0_2 = arith.constant 0 : index
    %6 = vector.load %arg2[%c0_1, %c0_2] : memref<128x128xbf16, #tpu.memory_space<vmem>>, vector<128x128xbf16>
    %cst = arith.constant dense<0.000000e+00> : vector<128x128xf32>
    %7 = tpu.matmul %0, %6, %cst {dimension_numbers = #tpu.dot_dimension_numbers<[1], [0], [0], [1], [0, 0, 1, 1], [], []>} : vector<128x128xbf16>, vector<128x128xbf16>, vector<128x128xf32> -> vector<128x128xf32>
    %c0_3 = arith.constant 0 : index
    %c0_4 = arith.constant 0 : index
    %c0_5 = arith.constant 0 : index
    %8 = vector.load %arg5[%c0_3, %c0_4, %c0_5] : memref<2x1x128xf32, #tpu.memory_space<vmem>>, vector<1x1x128xf32>
    %9 = vector.shape_cast %8 : vector<1x1x128xf32> to vector<1x128xf32>
    %10 = vector.broadcast %9 : vector<1x128xf32> to vector<128x128xf32>
    %11 = arith.addf %7, %10 : vector<128x128xf32>
    %12 = vector.broadcast %5 : vector<128x1xf32> to vector<128x128xf32>
    %13 = arith.mulf %11, %12 : vector<128x128xf32>
    %cst_6 = arith.constant dense<0.000000e+00> : vector<128xf32>
    %14 = vector.multi_reduction <add>, %13, %cst_6 [0] : vector<128x128xf32> to vector<128xf32>
    %15 = vector.shape_cast %14 : vector<128xf32> to vector<1x128xf32>
    %16 = arith.mulf %13, %13 : vector<128x128xf32>
    %cst_7 = arith.constant dense<0.000000e+00> : vector<128xf32>
    %17 = vector.multi_reduction <add>, %16, %cst_7 [0] : vector<128x128xf32> to vector<128xf32>
    %18 = vector.shape_cast %17 : vector<128xf32> to vector<1x128xf32>
    %cst_8 = arith.constant 3.125000e-02 : f32
    %19 = vector.broadcast %cst_8 : f32 to vector<1x128xf32>
    %20 = arith.mulf %15, %19 : vector<1x128xf32>
    %cst_9 = arith.constant 3.125000e-02 : f32
    %21 = vector.broadcast %cst_9 : f32 to vector<1x128xf32>
    %22 = arith.mulf %18, %21 : vector<1x128xf32>
    %23 = arith.mulf %20, %20 : vector<1x128xf32>
    %24 = arith.subf %22, %23 : vector<1x128xf32>
    %cst_10 = arith.constant 0.000000e+00 : f32
    %25 = vector.broadcast %cst_10 : f32 to vector<1x128xf32>
    %26 = arith.maximumf %24, %25 : vector<1x128xf32>
    %c0_11 = arith.constant 0 : index
    %c0_12 = arith.constant 0 : index
    %c0_13 = arith.constant 0 : index
    %27 = vector.load %arg6[%c0_11, %c0_12, %c0_13] : memref<2x1x128xf32, #tpu.memory_space<vmem>>, vector<1x1x128xf32>
    %28 = vector.shape_cast %27 : vector<1x1x128xf32> to vector<1x128xf32>
    %cst_14 = arith.constant 9.99999974E-6 : f32
    %29 = vector.broadcast %cst_14 : f32 to vector<1x128xf32>
    %30 = arith.addf %26, %29 : vector<1x128xf32>
    %31 = math.rsqrt %30 : vector<1x128xf32>
    %32 = arith.mulf %28, %31 : vector<1x128xf32>
    %c0_15 = arith.constant 0 : index
    %c0_16 = arith.constant 0 : index
    %c0_17 = arith.constant 0 : index
    %33 = vector.load %arg7[%c0_15, %c0_16, %c0_17] : memref<2x1x128xf32, #tpu.memory_space<vmem>>, vector<1x1x128xf32>
    %34 = vector.shape_cast %33 : vector<1x1x128xf32> to vector<1x128xf32>
    %35 = arith.mulf %20, %32 : vector<1x128xf32>
    %36 = arith.subf %34, %35 : vector<1x128xf32>
    %37 = vector.broadcast %32 : vector<1x128xf32> to vector<128x128xf32>
    %38 = arith.mulf %11, %37 : vector<128x128xf32>
    %39 = vector.broadcast %36 : vector<1x128xf32> to vector<128x128xf32>
    %40 = arith.addf %38, %39 : vector<128x128xf32>
    %c0_18 = arith.constant 0 : index
    %c0_19 = arith.constant 0 : index
    %41 = memref.load %arg0[%c0_18, %c0_19] : memref<2x1xf32, #tpu.memory_space<smem>>
    %cst_20 = arith.constant 0.000000e+00 : f32
    %42 = vector.broadcast %cst_20 : f32 to vector<128x128xf32>
    %43 = arith.cmpf ogt, %40, %42 : vector<128x128xf32>
    %44 = vector.broadcast %41 : f32 to vector<128x128xf32>
    %45 = arith.mulf %44, %40 : vector<128x128xf32>
    %46 = arith.select %43, %40, %45 : vector<128x128xi1>, vector<128x128xf32>
    %47 = arith.truncf %46 : vector<128x128xf32> to vector<128x128xbf16>
    %c0_21 = arith.constant 0 : index
    %c0_22 = arith.constant 0 : index
    %c0_23 = arith.constant 0 : index
    %48 = vector.load %arg4[%c0_21, %c0_22, %c0_23] : memref<1x128x128xbf16, #tpu.memory_space<vmem>>, vector<1x128x128xbf16>
    %49 = vector.shape_cast %48 : vector<1x128x128xbf16> to vector<128x128xbf16>
    %cst_24 = arith.constant dense<0.000000e+00> : vector<128x128xf32>
    %50 = tpu.matmul %0, %47, %cst_24 {dimension_numbers = #tpu.dot_dimension_numbers<[1], [0], [0], [1], [0, 0, 1, 1], [], []>} : vector<128x128xbf16>, vector<128x128xbf16>, vector<128x128xf32> -> vector<128x128xf32>
    %51 = arith.truncf %50 : vector<128x128xf32> to vector<128x128xbf16>
    %cst_25 = arith.constant dense<0.000000e+00> : vector<128x128xf32>
    %52 = tpu.matmul %51, %49, %cst_25 {dimension_numbers = #tpu.dot_dimension_numbers<[1], [0], [0], [1], [0, 0, 1, 1], [], []>} : vector<128x128xbf16>, vector<128x128xbf16>, vector<128x128xf32> -> vector<128x128xf32>
    %c1 = arith.constant 1 : index
    %c0_26 = arith.constant 0 : index
    %c0_27 = arith.constant 0 : index
    %53 = vector.load %arg5[%c1, %c0_26, %c0_27] : memref<2x1x128xf32, #tpu.memory_space<vmem>>, vector<1x1x128xf32>
    %54 = vector.shape_cast %53 : vector<1x1x128xf32> to vector<1x128xf32>
    %55 = vector.broadcast %54 : vector<1x128xf32> to vector<128x128xf32>
    %56 = arith.addf %52, %55 : vector<128x128xf32>
    %57 = vector.broadcast %5 : vector<128x1xf32> to vector<128x128xf32>
    %58 = arith.mulf %56, %57 : vector<128x128xf32>
    %cst_28 = arith.constant dense<0.000000e+00> : vector<128xf32>
    %59 = vector.multi_reduction <add>, %58, %cst_28 [0] : vector<128x128xf32> to vector<128xf32>
    %60 = vector.shape_cast %59 : vector<128xf32> to vector<1x128xf32>
    %61 = arith.mulf %58, %58 : vector<128x128xf32>
    %cst_29 = arith.constant dense<0.000000e+00> : vector<128xf32>
    %62 = vector.multi_reduction <add>, %61, %cst_29 [0] : vector<128x128xf32> to vector<128xf32>
    %63 = vector.shape_cast %62 : vector<128xf32> to vector<1x128xf32>
    %cst_30 = arith.constant 3.125000e-02 : f32
    %64 = vector.broadcast %cst_30 : f32 to vector<1x128xf32>
    %65 = arith.mulf %60, %64 : vector<1x128xf32>
    %cst_31 = arith.constant 3.125000e-02 : f32
    %66 = vector.broadcast %cst_31 : f32 to vector<1x128xf32>
    %67 = arith.mulf %63, %66 : vector<1x128xf32>
    %68 = arith.mulf %65, %65 : vector<1x128xf32>
    %69 = arith.subf %67, %68 : vector<1x128xf32>
    %cst_32 = arith.constant 0.000000e+00 : f32
    %70 = vector.broadcast %cst_32 : f32 to vector<1x128xf32>
    %71 = arith.maximumf %69, %70 : vector<1x128xf32>
    %c1_33 = arith.constant 1 : index
    %c0_34 = arith.constant 0 : index
    %c0_35 = arith.constant 0 : index
    %72 = vector.load %arg6[%c1_33, %c0_34, %c0_35] : memref<2x1x128xf32, #tpu.memory_space<vmem>>, vector<1x1x128xf32>
    %73 = vector.shape_cast %72 : vector<1x1x128xf32> to vector<1x128xf32>
    %cst_36 = arith.constant 9.99999974E-6 : f32
    %74 = vector.broadcast %cst_36 : f32 to vector<1x128xf32>
    %75 = arith.addf %71, %74 : vector<1x128xf32>
    %76 = math.rsqrt %75 : vector<1x128xf32>
    %77 = arith.mulf %73, %76 : vector<1x128xf32>
    %c1_37 = arith.constant 1 : index
    %c0_38 = arith.constant 0 : index
    %c0_39 = arith.constant 0 : index
    %78 = vector.load %arg7[%c1_37, %c0_38, %c0_39] : memref<2x1x128xf32, #tpu.memory_space<vmem>>, vector<1x1x128xf32>
    %79 = vector.shape_cast %78 : vector<1x1x128xf32> to vector<1x128xf32>
    %80 = arith.mulf %65, %77 : vector<1x128xf32>
    %81 = arith.subf %79, %80 : vector<1x128xf32>
    %82 = vector.broadcast %77 : vector<1x128xf32> to vector<128x128xf32>
    %83 = arith.mulf %56, %82 : vector<128x128xf32>
    %84 = vector.broadcast %81 : vector<1x128xf32> to vector<128x128xf32>
    %85 = arith.addf %83, %84 : vector<128x128xf32>
    %c1_40 = arith.constant 1 : index
    %c0_41 = arith.constant 0 : index
    %86 = memref.load %arg0[%c1_40, %c0_41] : memref<2x1xf32, #tpu.memory_space<smem>>
    %cst_42 = arith.constant 0.000000e+00 : f32
    %87 = vector.broadcast %cst_42 : f32 to vector<128x128xf32>
    %88 = arith.cmpf ogt, %85, %87 : vector<128x128xf32>
    %89 = vector.broadcast %86 : f32 to vector<128x128xf32>
    %90 = arith.mulf %89, %85 : vector<128x128xf32>
    %91 = arith.select %88, %85, %90 : vector<128x128xi1>, vector<128x128xf32>
    %c0_43 = arith.constant 0 : index
    %c0_44 = arith.constant 0 : index
    %92 = vector.load %arg8[%c0_43, %c0_44] : memref<128x128xf32, #tpu.memory_space<vmem>>, vector<128x128xf32>
    tpu.vector_store %arg8[%c0_43, %c0_44], %91 {strides = array<i32>} : memref<128x128xf32, #tpu.memory_space<vmem>>, vector<128x128xf32>,
    return
  }
}

</mosaic_0001>

<bundles_post_ra>
// kernel: encoder_forward.1
= control target key start
LH: loop header
LB: loop body
LE: loop exit
PB: predicated region body
PF: predicated region fallthrough
CT: control target
= control target key end

     0   :  { %13 = vsyncpa [#allocation3], 0  ;;  %s1744_s0 = inlined_call_operand.vmem [shape: f32[2,1], index: 0, kind: input, shape index: {}]   ;;  %s1745_s1 = inlined_call_operand.vmem [shape: bf16[128,128], index: 1, kind: input, shape index: {}]   ;;  %s1746_s2 = inlined_call_operand.vmem [shape: bf16[128,128], index: 2, kind: input, shape index: {}]   ;;  %s1747_s3 = inlined_call_operand.vmem [shape: bf16[8,128], index: 3, kind: input, shape index: {}]   ;;  %s1748_s4 = inlined_call_operand.vmem [shape: bf16[1,128,128], index: 4, kind: input, shape index: {}]   ;;  %s1749_s5 = inlined_call_operand.vmem [shape: f32[2,1,128], index: 5, kind: input, shape index: {}, may-alias: {5,7}]   ;;  %s1750_s6 = inlined_call_operand.vmem [shape: f32[2,1,128], index: 6, kind: input, shape index: {}]   ;;  %s1751_s7 = inlined_call_operand.vmem [shape: f32[2,1,128], index: 7, kind: input, shape index: {}, may-alias: {5,7}]   ;;  %s1752_s8 = inlined_call_operand.vmem [shape: f32[128,128], index: 8, kind: output, shape index: {}]  }
   0x1   :  { %s20_s3 = sshll.u32 %s1744_s0, 4  ;;  %s21_s3 = int_to_ptr.vmem [resolvable:$true] %s20_s3 }
   0x2   :  { %s1224_s29 = scalar_lea.vmem %s21_s3, 32  ;;  %p1229_p1 = scmp.lt.s32.totalorder %s21_s3, %s21_s3 }
   0x3   :  { %p1225_p0 = scmp.ne.s32.totalorder %s21_s3, %s1224_s29  ;;  %p1230_p2 = scmp.lt.s32.totalorder %s1224_s29, %s1224_s29 }
   0x5   :  { %p1231_p3 = por %p1230_p2, %p1229_p1 }
   0x7   :  { %p1232_p4 = pnand %p1231_p3, %p1225_p0 }
   0x9   :  { %1235 = shalt.err (!%p1232_p4)
}
   0xa   :  { %s1238_s30 = smov [#allocation2]  }
   0xb   :  { %23 = dma.vmem_to_smem %s21_s3, 32, %s1238_s30, [#allocation3]  }
   0xc   :  { %1236 = dma.done.wait [#allocation3], 32  }
   0xd   :  { %1237 = vsyncadd [#allocation3], 4294967264 }
   0xe   :  { %41 = sfence }
   0xf   :  { %v1196_v0 = vld [vmem:[%s1746_s2] sm:$0xff]   ;;  %v1197_v1 = vld [vmem:[%s1746_s2 + $0x8] sm:$0xff]   ;;  %v1198_v2 = vld [vmem:[%s1746_s2 + $0x10] sm:$0xff]   ;;  %s470_s29 = sld [smem:[#allocation2]] }
  0x10   :  { %1083 = vmatprep.subr.bf16.mxu0 %v1196_v0  ;;  %v1199_v3 = vld [vmem:[%s1746_s2 + $0x18] sm:$0xff]   ;;  %v1204_v4 = vld [vmem:[%s1745_s1] sm:$0xff]   ;;  %v1201_v6 = vld [vmem:[%s1746_s2 + $0x28] sm:$0xff]   ;;  %s1034_s16 = sld [smem:[#allocation2 + $0x80]] }
  0x11   :  { %1084 = vmatpush3.bf16.msra.mxu0 %v1196_v0  ;;  %1099 = vmatprep.mubr.bf16.mxu0 %v1204_v4  ;;  %v1200_v5 = vld [vmem:[%s1746_s2 + $0x20] sm:$0xff]   ;;  %v1202_v7 = vld [vmem:[%s1746_s2 + $0x30] sm:$0xff]   ;;  %v1203_v8 = vld [vmem:[%s1746_s2 + $0x38] sm:$0xff]  }
  0x12   :  { %1085 = vmatprep.subr.bf16.mxu0 %v1197_v1  ;;  %1131 = vmatprep.mubr.bf16.mxu1 %v1204_v4  ;;  %v1317_v9 = vld [vmem:[%s1745_s1 + $0x8] sm:$0xff]   ;;  %v1322_v10 = vld [vmem:[%s1745_s1 + $0x10] sm:$0xff]   ;;  %v1329_v11 = vld [vmem:[%s1745_s1 + $0x18] sm:$0xff]  }
  0x13   :  { %v1334_v12 = vld [vmem:[%s1745_s1 + $0x20] sm:$0xff]   ;;  %v1341_v13 = vld [vmem:[%s1745_s1 + $0x28] sm:$0xff]   ;;  %v1346_v14 = vld [vmem:[%s1745_s1 + $0x30] sm:$0xff]  }
  0x14   :  { %v1353_v15 = vld [vmem:[%s1745_s1 + $0x38] sm:$0xff]   ;;  %v1359_v16 = vld [vmem:[%s1749_s5] ss:$0 sm:$0xff]  ;;  %v1409_v50 = vld [vmem:[%s1748_s4 + $0x8] sm:$0xff]  }
  0x15   :  { %1086 = vmatpush3.bf16.msra.mxu0 %v1197_v1  ;;  %v1404_v49 = vld [vmem:[%s1748_s4] sm:$0xff]   ;;  %v1426_v1 = vld [vmem:[%s1748_s4 + $0x10] sm:$0xff]  }
  0x16   :  { %1087 = vmatprep.subr.bf16.mxu0 %v1198_v2 }
  0x19   :  { %1088 = vmatpush3.bf16.msra.mxu0 %v1198_v2 }
  0x1a   :  { %1089 = vmatprep.subr.bf16.mxu0 %v1199_v3 }
  0x1d   :  { %1090 = vmatpush3.bf16.msra.mxu0 %v1199_v3 }
  0x1e   :  { %1091 = vmatprep.subr.bf16.mxu0 %v1200_v5 }
  0x21   :  { %1092 = vmatpush3.bf16.msra.mxu0 %v1200_v5 }
  0x22   :  { %1093 = vmatprep.subr.bf16.mxu0 %v1201_v6 }
  0x25   :  { %1094 = vmatpush3.bf16.msra.mxu0 %v1201_v6 }
  0x26   :  { %1095 = vmatprep.subr.bf16.mxu0 %v1202_v7 }
  0x29   :  { %1096 = vmatpush3.bf16.msra.mxu0 %v1202_v7 }
  0x2a   :  { %1097 = vmatprep.subr.bf16.mxu0 %v1203_v8 }
  0x2d   :  { %1098 = vmatpush3.bf16.msra.mxu0 %v1203_v8 }
  0x2e   :  { %1147 = vmatprep.subr.bf16.mxu0 %v1404_v49 }
  0x30   :  { %1100 = vmatmul.mubr.bf16.vlgmr.msra.gmra.mrb[0].mxu0 %v1317_v9 }
  0x31   :  { %1103 = vmatprep.mubr.bf16.mxu0 %v1322_v10  ;;  %1148 = vmatpush3.bf16.msra.mxu0 %v1404_v49 }
  0x32   :  { %1149 = vmatprep.subr.bf16.mxu0 %v1409_v50 }
  0x35   :  { %1150 = vmatpush3.bf16.msra.mxu0 %v1409_v50 }
  0x36   :  { %1151 = vmatprep.subr.bf16.mxu0 %v1426_v1 }
  0x38   :  { %1104 = vmatmul.mubr.bf16.gmra.mrb[4].mxu0 %v1329_v11 }
  0x39   :  { %1107 = vmatprep.mubr.bf16.mxu0 %v1334_v12  ;;  %1152 = vmatpush3.bf16.msra.mxu0 %v1426_v1 }
  0x40   :  { %1108 = vmatmul.mubr.bf16.gmra.mrb[8].mxu0 %v1341_v13 }
  0x41   :  { %1111 = vmatprep.mubr.bf16.mxu0 %v1346_v14 }
  0x48   :  { %1112 = vmatmul.mubr.bf16.gmra.mrb[12].mxu0 %v1353_v15 }
 0x103   :  { %v1101_v17 = vpop.f32.mrb[0].mxu0 }
 0x104   :  { %v277_v18 = vpop.f32.mrb[1].mxu0  ;;  %v1365_v22 = vadd.f32 %v1101_v17, %v1359_v16 }
 0x105   :  { %v1362_v19 = vadd.f32 %v1359_v16, %v277_v18  ;;  %v1102_v20 = vpop.f32.mrb[2].mxu0 }
 0x106   :  { %v280_v21 = vpop.f32.mrb[3].mxu0  ;;  %v379_v27 = vmul.f32 %v1365_v22, %v1365_v22  ;;  %v1379_v28 = vadd.f32 %v1102_v20, %v1359_v16 }
 0x107   :  { %v1368_v23 = vadd.f32 %v1359_v16, %v280_v21  ;;  %v377_v24 = vmul.f32 %v1362_v19, %v1362_v19  ;;  %v1440_v21 = vld [vmem:[%s1748_s4 + $0x18] sm:$0xff]  }
 0x108   :  { %v380_v39 = vmul.f32 %v1379_v28, %v1379_v28  ;;  %1153 = vmatprep.subr.bf16.mxu0 %v1440_v21 }
 0x109   :  { %v356_v25 = vadd.f32 %v1368_v23, %v1362_v19  ;;  %v378_v26 = vmul.f32 %v1368_v23, %v1368_v23  ;;  %1154 = vmatpush3.bf16.msra.mxu0 %v1440_v21 }
 0x10b   :  { %v357_v29 = vadd.f32 %v356_v25, %v1365_v22  ;;  %v393_v30 = vadd.f32 %v378_v26, %v377_v24  ;;  %v1105_v31 = vpop.f32.mrb[4].mxu0 }
 0x10c   :  { %v1383_v32 = vadd.f32 %v1105_v31, %v1359_v16  ;;  %v293_v33 = vpop.f32.mrb[5].mxu0 }
 0x10d   :  { %v394_v34 = vadd.f32 %v393_v30, %v379_v27  ;;  %v1386_v35 = vadd.f32 %v1359_v16, %v293_v33  ;;  %v1106_v36 = vpop.f32.mrb[6].mxu0  ;;  %v358_v41 = vadd.f32 %v357_v29, %v1379_v28 }
 0x10e   :  { %v1389_v37 = vadd.f32 %v1106_v36, %v1359_v16  ;;  %v296_v38 = vpop.f32.mrb[7].mxu0  ;;  %v346_v43 = vmul.f32 0.0, %v1383_v32 }
 0x10f   :  { %v344_v40 = vmul.f32 0.0, %v1386_v35  ;;  %v1396_v42 = vadd.f32 %v1359_v16, %v296_v38  ;;  %v395_v46 = vadd.f32 %v394_v34, %v380_v39 }
 0x110   :  { %v347_v48 = vmul.f32 0.0, %v1389_v37  ;;  %v383_v57 = vmul.f32 %v346_v43, %v346_v43 }
 0x111   :  { %v359_v44 = vadd.f32 %v358_v41, %v344_v40  ;;  %v381_v45 = vmul.f32 %v344_v40, %v344_v40  ;;  %v345_v47 = vmul.f32 0.0, %v1396_v42 }
 0x112   :  { %v384_v62 = vmul.f32 %v347_v48, %v347_v48 }
 0x113   :  { %v396_v51 = vadd.f32 %v395_v46, %v381_v45  ;;  %v360_v52 = vadd.f32 %v359_v44, %v345_v47  ;;  %v382_v53 = vmul.f32 %v345_v47, %v345_v47  ;;  %v1109_v54 = vpop.f32.mrb[8].mxu0 }
 0x114   :  { %v1412_v55 = vadd.f32 %v1109_v54, %v1359_v16  ;;  %v309_v56 = vpop.f32.mrb[9].mxu0 }
 0x115   :  { %v361_v58 = vadd.f32 %v360_v52, %v346_v43  ;;  %v397_v59 = vadd.f32 %v396_v51, %v382_v53  ;;  %v1416_v60 = vadd.f32 %v1359_v16, %v309_v56  ;;  %v1110_v61 = vpop.f32.mrb[10].mxu0  ;;  %v1456_v43 = vld [vmem:[%s1748_s4 + $0x20] sm:$0xff]   ;;  %v1466_v56 = vld [vmem:[%s1748_s4 + $0x28] sm:$0xff]  }
 0x116   :  { %v1420_v63 = vadd.f32 %v1110_v61, %v1359_v16  ;;  %v312_v0 = vpop.f32.mrb[11].mxu0  ;;  %v350_v6 = vmul.f32 0.0, %v1412_v55  ;;  %1155 = vmatprep.subr.bf16.mxu0 %v1456_v43 }
 0x117   :  { %v398_v2 = vadd.f32 %v397_v59, %v383_v57  ;;  %v348_v3 = vmul.f32 0.0, %v1416_v60  ;;  %v362_v4 = vadd.f32 %v361_v58, %v347_v48  ;;  %v1430_v5 = vadd.f32 %v1359_v16, %v312_v0  ;;  %1156 = vmatpush3.bf16.msra.mxu0 %v1456_v43 }
 0x118   :  { %v351_v20 = vmul.f32 0.0, %v1420_v63  ;;  %v387_v31 = vmul.f32 %v350_v6, %v350_v6  ;;  %1157 = vmatprep.subr.bf16.mxu0 %v1466_v56 }
 0x119   :  { %v363_v7 = vadd.f32 %v362_v4, %v348_v3  ;;  %v385_v8 = vmul.f32 %v348_v3, %v348_v3  ;;  %v399_v17 = vadd.f32 %v398_v2, %v384_v62  ;;  %v349_v18 = vmul.f32 0.0, %v1430_v5  ;;  %v1474_v2 = vld [vmem:[%s1748_s4 + $0x30] sm:$0xff]  }
 0x11a   :  { %v388_v39 = vmul.f32 %v351_v20, %v351_v20 }
 0x11b   :  { %v400_v24 = vadd.f32 %v399_v17, %v385_v8  ;;  %v364_v25 = vadd.f32 %v363_v7, %v349_v18  ;;  %v386_v26 = vmul.f32 %v349_v18, %v349_v18  ;;  %v1113_v27 = vpop.f32.mrb[12].mxu0  ;;  %1158 = vmatpush3.bf16.msra.mxu0 %v1466_v56 }
 0x11c   :  { %v1443_v29 = vadd.f32 %v1113_v27, %v1359_v16  ;;  %v325_v30 = vpop.f32.mrb[13].mxu0  ;;  %1159 = vmatprep.subr.bf16.mxu0 %v1474_v2 }
 0x11d   :  { %v365_v33 = vadd.f32 %v364_v25, %v350_v6  ;;  %v401_v34 = vadd.f32 %v400_v24, %v386_v26  ;;  %v1446_v36 = vadd.f32 %v1359_v16, %v325_v30  ;;  %v1114_v38 = vpop.f32.mrb[14].mxu0 }
 0x11e   :  { %v1450_v40 = vadd.f32 %v1114_v38, %v1359_v16  ;;  %v328_v41 = vpop.f32.mrb[15].mxu0  ;;  %v354_v48 = vmul.f32 0.0, %v1443_v29 }
 0x11f   :  { %v402_v44 = vadd.f32 %v401_v34, %v387_v31  ;;  %v352_v45 = vmul.f32 0.0, %v1446_v36  ;;  %v366_v46 = vadd.f32 %v365_v33, %v351_v20  ;;  %v329_v47 = vadd.f32 %v1359_v16, %v328_v41  ;;  %1160 = vmatpush3.bf16.msra.mxu0 %v1474_v2 }
 0x120   :  { %v355_v58 = vmul.f32 0.0, %v1450_v40  ;;  %v391_v61 = vmul.f32 %v354_v48, %v354_v48 }
 0x121   :  { %v367_v51 = vadd.f32 %v366_v46, %v352_v45  ;;  %v389_v52 = vmul.f32 %v352_v45, %v352_v45  ;;  %v403_v53 = vadd.f32 %v402_v44, %v388_v39  ;;  %v353_v54 = vmul.f32 0.0, %v329_v47 }
 0x122   :  { %v392_v3 = vmul.f32 %v355_v58, %v355_v58 }
 0x123   :  { %v404_v57 = vadd.f32 %v403_v53, %v389_v52  ;;  %v368_v59 = vadd.f32 %v367_v51, %v353_v54  ;;  %v390_v16 = vmul.f32 %v353_v54, %v353_v54  ;;  %v419_v52 = vld [vmem:[%s1750_s6] sm:$0x1] }
 0x125   :  { %v369_v62 = vadd.f32 %v368_v59, %v354_v48  ;;  %v405_v0 = vadd.f32 %v404_v57, %v390_v16  ;;  %v427_v48 = vlaneseq }
 0x127   :  { %v370_v4 = vadd.f32 %v369_v62, %v355_v58  ;;  %v406_v6 = vadd.f32 %v405_v0, %v391_v61  ;;  %v428_v51 = vshrl.u32 %v427_v48, 7  ;;  %v423_v58 = vld [vmem:[%s1751_s7] sm:$0x1]  ;;  %v1490_v61 = vstv %s470_s29 }
 0x129   :  { %v371_v7 = vrot.slane %v370_v4, 4  ;;  %v407_v8 = vadd.f32 %v406_v6, %v392_v3  ;;  %v1482_v53 = vsub.s32 0, %v428_v51 }
 0x12b   :  { %v372_v17 = vadd.f32 %v371_v7, %v370_v4  ;;  %v408_v18 = vrot.slane %v407_v8, 4 }
 0x12d   :  { %v373_v20 = vrot.slane %v372_v17, 2  ;;  %v409_v24 = vadd.f32 %v408_v18, %v407_v8 }
 0x12f   :  { %v374_v25 = vadd.f32 %v373_v20, %v372_v17  ;;  %v410_v26 = vrot.slane %v409_v24, 2 }
 0x131   :  { %v375_v27 = vrot.slane %v374_v25, 1  ;;  %v411_v30 = vadd.f32 %v410_v26, %v409_v24 }
 0x133   :  { %v376_v31 = vadd.f32 %v375_v27, %v374_v25  ;;  %v412_v33 = vrot.slane %v411_v30, 1 }
 0x135   :  { %v413_v34 = vadd.f32 %v412_v33, %v411_v30  ;;  %v414_v38 = vmul.f32 0.03125, %v376_v31 }
 0x137   :  { %v415_v39 = vmul.f32 0.03125, %v413_v34  ;;  %v416_v41 = vmul.f32 %v414_v38, %v414_v38 }
 0x139   :  { %v417_v44 = vsub.f32 %v415_v39, %v416_v41 }
 0x13b   :  { %v418_v45 = vmax.f32 %v417_v44, 0.0 }
 0x13d   :  { %v420_v46 = vadd.f32 1e-05, %v418_v45 }
 0x13f   :  { %1220 = vrsqrt.f32 %v420_v46 }
 0x149   :  { %v1221_v54 = vpop.eup %1220 }
 0x14a   :  { %v422_v57 = vmul.f32 %v1221_v54, %v419_v52 }
 0x14c   :  { %v424_v59 = vmul.f32 %v422_v57, %v414_v38  ;;  %v1488_v16 = vrot.slane %v422_v57, %v1482_v53 }
 0x14e   :  { %v425_v62 = vsub.f32 %v423_v58, %v424_v59  ;;  %v445_v0 = vmul.f32 %v1488_v16, %v329_v47  ;;  %v432_v3 = vmul.f32 %v1488_v16, %v1362_v19  ;;  %v433_v4 = vmul.f32 %v1488_v16, %v1368_v23 }
 0x14f   :  { %v434_v6 = vmul.f32 %v1488_v16, %v1365_v22  ;;  %v435_v7 = vmul.f32 %v1488_v16, %v1379_v28  ;;  %v436_v8 = vmul.f32 %v1488_v16, %v1386_v35  ;;  %v437_v17 = vmul.f32 %v1488_v16, %v1396_v42 }
 0x150   :  { %v1506_v47 = vrot.slane %v425_v62, %v1482_v53  ;;  %v438_v19 = vmul.f32 %v1488_v16, %v1383_v32  ;;  %v439_v23 = vmul.f32 %v1488_v16, %v1389_v37  ;;  %v440_v22 = vmul.f32 %v1488_v16, %v1416_v60 }
 0x151   :  { %v441_v28 = vmul.f32 %v1488_v16, %v1430_v5  ;;  %v442_v35 = vmul.f32 %v1488_v16, %v1412_v55  ;;  %v443_v42 = vmul.f32 %v1488_v16, %v1420_v63  ;;  %v444_v18 = vmul.f32 %v1488_v16, %v1446_v36 }
 0x152   :  { %v1523_v32 = vadd.f32 %v1506_v47, %v445_v0  ;;  %v454_v37 = vadd.f32 %v1506_v47, %v432_v3  ;;  %v455_v20 = vadd.f32 %v1506_v47, %v433_v4  ;;  %v456_v60 = vadd.f32 %v1506_v47, %v434_v6 }
 0x153   :  { %v457_v5 = vadd.f32 %v1506_v47, %v435_v7  ;;  %v458_v24 = vadd.f32 %v1506_v47, %v436_v8  ;;  %v459_v55 = vadd.f32 %v1506_v47, %v437_v17  ;;  %v460_v63 = vadd.f32 %v1506_v47, %v438_v19 }
 0x154   :  { %v501_v36 = vmul.f32 %v1490_v61, %v1523_v32  ;;  %vm471_vm0 = vcmp.gt.f32.partialorder %v454_v37, 0.0  ;;  %vm472_vm1 = vcmp.gt.f32.partialorder %v455_v20, 0.0  ;;  %v488_v25 = vmul.f32 %v1490_v61, %v454_v37 }
 0x155   :  { %v489_v26 = vmul.f32 %v1490_v61, %v455_v20  ;;  %vm473_vm2 = vcmp.gt.f32.partialorder %v456_v60, 0.0  ;;  %vm474_vm3 = vcmp.gt.f32.partialorder %v457_v5, 0.0  ;;  %v490_v27 = vmul.f32 %v1490_v61, %v456_v60 }
 0x156   :  { %v504_v30 = vsel %vm471_vm0, %v454_v37, %v488_v25  ;;  %v491_v31 = vmul.f32 %v1490_v61, %v457_v5  ;;  %vm475_vm4 = vcmp.gt.f32.partialorder %v458_v24, 0.0  ;;  %vm476_vm5 = vcmp.gt.f32.partialorder %v459_v55, 0.0 }
 0x157   :  { %v505_v33 = vsel %vm472_vm1, %v455_v20, %v489_v26  ;;  %v506_v34 = vsel %vm473_vm2, %v456_v60, %v490_v27  ;;  %v492_v38 = vmul.f32 %v1490_v61, %v458_v24  ;;  %v493_v39 = vmul.f32 %v1490_v61, %v459_v55 }
 0x158   :  { %v520_v41 = vpack.c.bf16 %v505_v33, %v504_v30  ;;  %v507_v44 = vsel %vm474_vm3, %v457_v5, %v491_v31  ;;  %v461_v45 = vadd.f32 %v1506_v47, %v439_v23  ;;  %vm477_vm6 = vcmp.gt.f32.partialorder %v460_v63, 0.0 }
 0x159   :  { %v521_v46 = vpack.c.bf16 %v507_v44, %v506_v34  ;;  %v508_v48 = vsel %vm475_vm4, %v458_v24, %v492_v38  ;;  %v509_v51 = vsel %vm476_vm5, %v459_v55, %v493_v39  ;;  %v494_v52 = vmul.f32 %v1490_v61, %v460_v63 }
 0x15a   :  { %1115 = vmatprep.subr.bf16.mxu1 %v520_v41  ;;  %v522_v54 = vpack.c.bf16 %v509_v51, %v508_v48  ;;  %vm478_vm7 = vcmp.gt.f32.partialorder %v461_v45, 0.0  ;;  %v495_v57 = vmul.f32 %v1490_v61, %v461_v45  ;;  %v462_v58 = vadd.f32 %v1506_v47, %v440_v22 }
 0x15b   :  { %1116 = vmatpush3.bf16.msra.mxu1 %v520_v41  ;;  %v510_v59 = vsel %vm477_vm6, %v460_v63, %v494_v52  ;;  %v463_v62 = vadd.f32 %v1506_v47, %v441_v28  ;;  %v464_v0 = vadd.f32 %v1506_v47, %v442_v35  ;;  %v465_v3 = vadd.f32 %v1506_v47, %v443_v42 }
 0x15c   :  { %1117 = vmatprep.subr.bf16.mxu1 %v521_v46  ;;  %v511_v4 = vsel %vm478_vm7, %v461_v45, %v495_v57  ;;  %vm479_vm8 = vcmp.gt.f32.partialorder %v462_v58, 0.0  ;;  %v496_v6 = vmul.f32 %v1490_v61, %v462_v58  ;;  %v466_v7 = vadd.f32 %v1506_v47, %v444_v18  ;;  %v1590_v45 = vld [vmem:[%s1749_s5 + $0x1] ss:$0 sm:$0xff] }
 0x15d   :  { %v523_v8 = vpack.c.bf16 %v511_v4, %v510_v59  ;;  %vm480_vm9 = vcmp.gt.f32.partialorder %v463_v62, 0.0  ;;  %v497_v17 = vmul.f32 %v1490_v61, %v463_v62  ;;  %vm481_vm10 = vcmp.gt.f32.partialorder %v464_v0, 0.0 }
 0x15e   :  { %v512_v19 = vsel %vm479_vm8, %v462_v58, %v496_v6  ;;  %vm482_vm11 = vcmp.gt.f32.partialorder %v465_v3, 0.0  ;;  %v498_v23 = vmul.f32 %v1490_v61, %v464_v0  ;;  %v499_v22 = vmul.f32 %v1490_v61, %v465_v3 }
 0x15f   :  { %1118 = vmatpush3.bf16.msra.mxu1 %v521_v46  ;;  %v513_v28 = vsel %vm480_vm9, %v463_v62, %v497_v17  ;;  %vm483_vm12 = vcmp.gt.f32.partialorder %v466_v7, 0.0  ;;  %vm484_vm13 = vcmp.gt.f32.partialorder %v1523_v32, 0.0  ;;  %v500_v35 = vmul.f32 %v1490_v61, %v466_v7 }
 0x160   :  { %1119 = vmatprep.subr.bf16.mxu1 %v522_v54  ;;  %v524_v42 = vpack.c.bf16 %v513_v28, %v512_v19  ;;  %v514_v18 = vsel %vm481_vm10, %v464_v0, %v498_v23  ;;  %v515_v37 = vsel %vm482_vm11, %v465_v3, %v499_v22  ;;  %v517_v20 = vsel %vm484_vm13, %v1523_v32, %v501_v36 }
 0x161   :  { %v525_v60 = vpack.c.bf16 %v515_v37, %v514_v18  ;;  %v516_v5 = vsel %vm483_vm12, %v466_v7, %v500_v35  ;;  %v446_v24 = vmul.f32 %v1488_v16, %v1443_v29  ;;  %v447_v55 = vmul.f32 %v1488_v16, %v1450_v40 }
 0x162   :  { %v526_v63 = vpack.c.bf16 %v517_v20, %v516_v5 }
 0x163   :  { %1120 = vmatpush3.bf16.msra.mxu1 %v522_v54  ;;  %v468_v25 = vadd.f32 %v1506_v47, %v446_v24  ;;  %v469_v26 = vadd.f32 %v1506_v47, %v447_v55 }
 0x164   :  { %1121 = vmatprep.subr.bf16.mxu1 %v523_v8 }
 0x165   :  { %vm485_vm14 = vcmp.gt.f32.partialorder %v468_v25, 0.0  ;;  %vm486_vm15 = vcmp.gt.f32.partialorder %v469_v26, 0.0  ;;  %v502_v27 = vmul.f32 %v1490_v61, %v468_v25  ;;  %v503_v32 = vmul.f32 %v1490_v61, %v469_v26 }
 0x167   :  { %1122 = vmatpush3.bf16.msra.mxu1 %v523_v8  ;;  %v518_v36 = vsel %vm485_vm14, %v468_v25, %v502_v27  ;;  %v519_v30 = vsel %vm486_vm15, %v469_v26, %v503_v32 }
 0x168   :  { %1123 = vmatprep.subr.bf16.mxu1 %v524_v42  ;;  %v527_v29 = vpack.c.bf16 %v519_v30, %v518_v36 }
 0x16b   :  { %1124 = vmatpush3.bf16.msra.mxu1 %v524_v42 }
 0x16c   :  { %1125 = vmatprep.subr.bf16.mxu1 %v525_v60 }
 0x16f   :  { %1126 = vmatpush3.bf16.msra.mxu1 %v525_v60 }
 0x170   :  { %1127 = vmatprep.subr.bf16.mxu1 %v526_v63 }
 0x173   :  { %1128 = vmatpush3.bf16.msra.mxu1 %v526_v63 }
 0x174   :  { %1129 = vmatprep.subr.bf16.mxu1 %v527_v29 }
 0x177   :  { %1130 = vmatpush3.bf16.msra.mxu1 %v527_v29 }
 0x178   :  { %1179 = vmatprep.subr.bf16.mxu1 %v1404_v49 }
 0x17a   :  { %1132 = vmatmul.mubr.bf16.vlgmr.msra.gmra.mrb[0].mxu1 %v1317_v9  ;;  %v1219_v9 = vld [vmem:[%s1748_s4 + $0x38] sm:$0xff]  }
 0x17b   :  { %1135 = vmatprep.mubr.bf16.mxu1 %v1322_v10  ;;  %1187 = vmatpush3.bf16.msra.mxu1 %v1404_v49 }
 0x17c   :  { %1180 = vmatprep.subr.bf16.mxu1 %v1409_v50  ;;  %1161 = vmatprep.subr.bf16.mxu0 %v1219_v9 }
 0x17d   :  { %1162 = vmatpush3.bf16.msra.mxu0 %v1219_v9 }
 0x17f   :  { %1188 = vmatpush3.bf16.msra.mxu1 %v1409_v50 }
 0x180   :  { %1181 = vmatprep.subr.bf16.mxu1 %v1426_v1 }
 0x182   :  { %1136 = vmatmul.mubr.bf16.gmra.mrb[4].mxu1 %v1329_v11 }
 0x183   :  { %1139 = vmatprep.mubr.bf16.mxu1 %v1334_v12  ;;  %1189 = vmatpush3.bf16.msra.mxu1 %v1426_v1 }
 0x184   :  { %1182 = vmatprep.subr.bf16.mxu1 %v1440_v21 }
 0x187   :  { %1190 = vmatpush3.bf16.msra.mxu1 %v1440_v21 }
 0x188   :  { %1183 = vmatprep.subr.bf16.mxu1 %v1456_v43 }
 0x18a   :  { %1140 = vmatmul.mubr.bf16.gmra.mrb[8].mxu1 %v1341_v13 }
 0x18b   :  { %1143 = vmatprep.mubr.bf16.mxu1 %v1346_v14  ;;  %1191 = vmatpush3.bf16.msra.mxu1 %v1456_v43 }
 0x18c   :  { %1184 = vmatprep.subr.bf16.mxu1 %v1466_v56 }
 0x18f   :  { %1192 = vmatpush3.bf16.msra.mxu1 %v1466_v56 }
 0x190   :  { %1185 = vmatprep.subr.bf16.mxu1 %v1474_v2 }
 0x192   :  { %1144 = vmatmul.mubr.bf16.gmra.mrb[12].mxu1 %v1353_v15 }
 0x193   :  { %1193 = vmatpush3.bf16.msra.mxu1 %v1474_v2 }
 0x194   :  { %1186 = vmatprep.subr.bf16.mxu1 %v1219_v9 }
 0x197   :  { %1194 = vmatpush3.bf16.msra.mxu1 %v1219_v9 }
 0x24d   :  { %v1133_v10 = vpop.f32.mrb[0].mxu1 }
 0x24e   :  { %v578_v11 = vpop.f32.mrb[1].mxu1 }
 0x24f   :  { %v1134_v12 = vpop.f32.mrb[2].mxu1 }
 0x250   :  { %v642_v13 = vpack.c.bf16 %v1134_v12, %v1133_v10  ;;  %v581_v14 = vpop.f32.mrb[3].mxu1 }
 0x251   :  { %v641_v49 = vpack.c.bf16 %v581_v14, %v578_v11 }
 0x253   :  { %1163 = vmatprep.mubr.bf16.mxu0 %v641_v49 }
 0x254   :  { %1164 = vmatmul.mubr.bf16.vlgmr.msra.gmra.mrb[16].mxu0 %v642_v13 }
 0x255   :  { %v1137_v50 = vpop.f32.mrb[4].mxu1 }
 0x256   :  { %v594_v15 = vpop.f32.mrb[5].mxu1 }
 0x257   :  { %v1138_v1 = vpop.f32.mrb[6].mxu1 }
 0x258   :  { %v644_v21 = vpack.c.bf16 %v1138_v1, %v1137_v50  ;;  %v597_v40 = vpop.f32.mrb[7].mxu1 }
 0x259   :  { %v643_v43 = vpack.c.bf16 %v597_v40, %v594_v15 }
 0x25b   :  { %1167 = vmatprep.mubr.bf16.mxu0 %v643_v43 }
 0x25c   :  { %1168 = vmatmul.mubr.bf16.gmra.mrb[20].mxu0 %v644_v21 }
 0x25d   :  { %v1141_v56 = vpop.f32.mrb[8].mxu1 }
 0x25e   :  { %v610_v2 = vpop.f32.mrb[9].mxu1 }
 0x25f   :  { %v1142_v16 = vpop.f32.mrb[10].mxu1 }
 0x260   :  { %v646_v61 = vpack.c.bf16 %v1142_v16, %v1141_v56  ;;  %v613_v47 = vpop.f32.mrb[11].mxu1 }
 0x261   :  { %v645_v31 = vpack.c.bf16 %v613_v47, %v610_v2 }
 0x263   :  { %1171 = vmatprep.mubr.bf16.mxu1 %v645_v31 }
 0x264   :  { %1172 = vmatmul.mubr.bf16.vlgmr.msra.gmra.mrb[16].mxu1 %v646_v61 }
 0x265   :  { %v1145_v33 = vpop.f32.mrb[12].mxu1 }
 0x266   :  { %v626_v34 = vpop.f32.mrb[13].mxu1 }
 0x267   :  { %v1146_v38 = vpop.f32.mrb[14].mxu1 }
 0x268   :  { %v648_v39 = vpack.c.bf16 %v1146_v38, %v1145_v33  ;;  %v629_v41 = vpop.f32.mrb[15].mxu1 }
 0x269   :  { %v647_v44 = vpack.c.bf16 %v629_v41, %v626_v34 }
 0x26b   :  { %1175 = vmatprep.mubr.bf16.mxu1 %v647_v44 }
 0x26c   :  { %1176 = vmatmul.mubr.bf16.gmra.mrb[20].mxu1 %v648_v39 }
 0x327   :  { %v1165_v46 = vpop.f32.mrb[16].mxu0 }
 0x328   :  { %v739_v48 = vpop.f32.mrb[17].mxu0  ;;  %v1596_v57 = vadd.f32 %v1165_v46, %v1590_v45 }
 0x329   :  { %v1593_v51 = vadd.f32 %v1590_v45, %v739_v48  ;;  %v1166_v52 = vpop.f32.mrb[18].mxu0 }
 0x32a   :  { %v742_v54 = vpop.f32.mrb[19].mxu0  ;;  %v841_v3 = vmul.f32 %v1596_v57, %v1596_v57  ;;  %v1610_v4 = vadd.f32 %v1166_v52, %v1590_v45 }
 0x32b   :  { %v1599_v58 = vadd.f32 %v1590_v45, %v742_v54  ;;  %v839_v59 = vmul.f32 %v1593_v51, %v1593_v51 }
 0x32c   :  { %v842_v18 = vmul.f32 %v1610_v4, %v1610_v4 }
 0x32d   :  { %v818_v62 = vadd.f32 %v1599_v58, %v1593_v51  ;;  %v840_v0 = vmul.f32 %v1599_v58, %v1599_v58 }
 0x32f   :  { %v819_v6 = vadd.f32 %v818_v62, %v1596_v57  ;;  %v855_v7 = vadd.f32 %v840_v0, %v839_v59  ;;  %v1169_v8 = vpop.f32.mrb[20].mxu0 }
 0x330   :  { %v1614_v17 = vadd.f32 %v1169_v8, %v1590_v45  ;;  %v755_v19 = vpop.f32.mrb[21].mxu0 }
 0x331   :  { %v856_v23 = vadd.f32 %v855_v7, %v841_v3  ;;  %v1617_v22 = vadd.f32 %v1590_v45, %v755_v19  ;;  %v1170_v28 = vpop.f32.mrb[22].mxu0  ;;  %v820_v20 = vadd.f32 %v819_v6, %v1610_v4 }
 0x332   :  { %v1620_v35 = vadd.f32 %v1170_v28, %v1590_v45  ;;  %v758_v42 = vpop.f32.mrb[23].mxu0  ;;  %v808_v5 = vmul.f32 0.0, %v1614_v17 }
 0x333   :  { %v806_v37 = vmul.f32 0.0, %v1617_v22  ;;  %v1627_v60 = vadd.f32 %v1590_v45, %v758_v42  ;;  %v857_v63 = vadd.f32 %v856_v23, %v842_v18 }
 0x334   :  { %v809_v26 = vmul.f32 0.0, %v1620_v35  ;;  %v845_v10 = vmul.f32 %v808_v5, %v808_v5 }
 0x335   :  { %v821_v24 = vadd.f32 %v820_v20, %v806_v37  ;;  %v843_v55 = vmul.f32 %v806_v37, %v806_v37  ;;  %v807_v25 = vmul.f32 0.0, %v1627_v60 }
 0x336   :  { %v846_v49 = vmul.f32 %v809_v26, %v809_v26 }
 0x337   :  { %v858_v27 = vadd.f32 %v857_v63, %v843_v55  ;;  %v822_v32 = vadd.f32 %v821_v24, %v807_v25  ;;  %v844_v36 = vmul.f32 %v807_v25, %v807_v25  ;;  %v1173_v30 = vpop.f32.mrb[16].mxu1 }
 0x338   :  { %v1633_v29 = vadd.f32 %v1173_v30, %v1590_v45  ;;  %v771_v9 = vpop.f32.mrb[17].mxu1 }
 0x339   :  { %v823_v11 = vadd.f32 %v822_v32, %v808_v5  ;;  %v859_v12 = vadd.f32 %v858_v27, %v844_v36  ;;  %v1636_v13 = vadd.f32 %v1590_v45, %v771_v9  ;;  %v1174_v14 = vpop.f32.mrb[18].mxu1 }
 0x33a   :  { %v1639_v50 = vadd.f32 %v1174_v14, %v1590_v45  ;;  %v774_v15 = vpop.f32.mrb[19].mxu1  ;;  %v812_v56 = vmul.f32 0.0, %v1633_v29 }
 0x33b   :  { %v860_v1 = vadd.f32 %v859_v12, %v845_v10  ;;  %v810_v21 = vmul.f32 0.0, %v1636_v13  ;;  %v824_v40 = vadd.f32 %v823_v11, %v809_v26  ;;  %v1643_v43 = vadd.f32 %v1590_v45, %v774_v15 }
 0x33c   :  { %v813_v31 = vmul.f32 0.0, %v1639_v50  ;;  %v849_v46 = vmul.f32 %v812_v56, %v812_v56 }
 0x33d   :  { %v825_v2 = vadd.f32 %v824_v40, %v810_v21  ;;  %v847_v16 = vmul.f32 %v810_v21, %v810_v21  ;;  %v861_v61 = vadd.f32 %v860_v1, %v846_v49  ;;  %v811_v47 = vmul.f32 0.0, %v1643_v43 }
 0x33e   :  { %v850_v62 = vmul.f32 %v813_v31, %v813_v31 }
 0x33f   :  { %v862_v33 = vadd.f32 %v861_v61, %v847_v16  ;;  %v826_v34 = vadd.f32 %v825_v2, %v811_v47  ;;  %v848_v38 = vmul.f32 %v811_v47, %v811_v47  ;;  %v1177_v39 = vpop.f32.mrb[20].mxu1 }
 0x340   :  { %v1649_v41 = vadd.f32 %v1177_v39, %v1590_v45  ;;  %v787_v44 = vpop.f32.mrb[21].mxu1 }
 0x341   :  { %v827_v48 = vadd.f32 %v826_v34, %v812_v56  ;;  %v863_v52 = vadd.f32 %v862_v33, %v848_v38  ;;  %v788_v54 = vadd.f32 %v1590_v45, %v787_v44  ;;  %v1178_v59 = vpop.f32.mrb[22].mxu1  ;;  %v1032_v34 = vld [vmem:[%s1750_s6 + $0x1] sm:$0x1] }
 0x342   :  { %v1653_v0 = vadd.f32 %v1178_v59, %v1590_v45  ;;  %v790_v3 = vpop.f32.mrb[23].mxu1  ;;  %v816_v23 = vmul.f32 0.0, %v1649_v41  ;;  %v1033_v44 = vld [vmem:[%s1751_s7 + $0x1] sm:$0x1] }
 0x343   :  { %v864_v6 = vadd.f32 %v863_v52, %v849_v46  ;;  %v814_v7 = vmul.f32 0.0, %v788_v54  ;;  %v828_v8 = vadd.f32 %v827_v48, %v813_v31  ;;  %v791_v19 = vadd.f32 %v1590_v45, %v790_v3 }
 0x344   :  { %v817_v5 = vmul.f32 0.0, %v1653_v0  ;;  %v853_v63 = vmul.f32 %v816_v23, %v816_v23 }
 0x345   :  { %v829_v28 = vadd.f32 %v828_v8, %v814_v7  ;;  %v851_v42 = vmul.f32 %v814_v7, %v814_v7  ;;  %v865_v18 = vadd.f32 %v864_v6, %v850_v62  ;;  %v815_v37 = vmul.f32 0.0, %v791_v19 }
 0x346   :  { %v854_v27 = vmul.f32 %v817_v5, %v817_v5 }
 0x347   :  { %v866_v20 = vadd.f32 %v865_v18, %v851_v42  ;;  %v830_v24 = vadd.f32 %v829_v28, %v815_v37  ;;  %v852_v55 = vmul.f32 %v815_v37, %v815_v37 }
 0x349   :  { %v831_v25 = vadd.f32 %v830_v24, %v816_v23  ;;  %v867_v26 = vadd.f32 %v866_v20, %v852_v55  ;;  %v951_v20 = vstv %s1034_s16 }
 0x34b   :  { %v832_v32 = vadd.f32 %v831_v25, %v817_v5  ;;  %v868_v36 = vadd.f32 %v867_v26, %v853_v63 }
 0x34d   :  { %v833_v30 = vrot.slane %v832_v32, 4  ;;  %v869_v9 = vadd.f32 %v868_v36, %v854_v27 }
 0x34f   :  { %v834_v45 = vadd.f32 %v833_v30, %v832_v32  ;;  %v870_v10 = vrot.slane %v869_v9, 4 }
 0x351   :  { %v835_v11 = vrot.slane %v834_v45, 2  ;;  %v871_v12 = vadd.f32 %v870_v10, %v869_v9 }
 0x353   :  { %v836_v14 = vadd.f32 %v835_v11, %v834_v45  ;;  %v872_v49 = vrot.slane %v871_v12, 2 }
 0x355   :  { %v837_v15 = vrot.slane %v836_v14, 1  ;;  %v873_v1 = vadd.f32 %v872_v49, %v871_v12 }
 0x357   :  { %v838_v21 = vadd.f32 %v837_v15, %v836_v14  ;;  %v874_v40 = vrot.slane %v873_v1, 1 }
 0x359   :  { %v875_v56 = vadd.f32 %v874_v40, %v873_v1  ;;  %v876_v2 = vmul.f32 0.03125, %v838_v21 }
 0x35b   :  { %v877_v16 = vmul.f32 0.03125, %v875_v56  ;;  %v878_v61 = vmul.f32 %v876_v2, %v876_v2 }
 0x35d   :  { %v879_v47 = vsub.f32 %v877_v16, %v878_v61 }
 0x35f   :  { %v880_v31 = vmax.f32 %v879_v47, 0.0 }
 0x361   :  { %v883_v33 = vadd.f32 1e-05, %v880_v31 }
 0x363   :  { %1222 = vrsqrt.f32 %v883_v33 }
 0x36d   :  { %v1223_v38 = vpop.eup %1222 }
 0x36e   :  { %v885_v39 = vmul.f32 %v1223_v38, %v1032_v34 }
 0x370   :  { %v888_v46 = vmul.f32 %v885_v39, %v876_v2  ;;  %v894_v48 = vrot.slane %v885_v39, %v1482_v53 }
 0x372   :  { %v889_v52 = vsub.f32 %v1033_v44, %v888_v46  ;;  %v896_v59 = vmul.f32 %v894_v48, %v1593_v51  ;;  %v897_v62 = vmul.f32 %v894_v48, %v1599_v58  ;;  %v900_v3 = vmul.f32 %v894_v48, %v1617_v22 }
 0x373   :  { %v901_v6 = vmul.f32 %v894_v48, %v1627_v60  ;;  %v902_v7 = vmul.f32 %v894_v48, %v1614_v17  ;;  %v903_v8 = vmul.f32 %v894_v48, %v1620_v35  ;;  %v904_v23 = vmul.f32 %v894_v48, %v1636_v13 }
 0x374   :  { %v905_v28 = vmul.f32 %v894_v48, %v1643_v43  ;;  %v906_v42 = vmul.f32 %v894_v48, %v1633_v29  ;;  %v907_v18 = vmul.f32 %v894_v48, %v1639_v50  ;;  %v908_v37 = vmul.f32 %v894_v48, %v788_v54 }
 0x375   :  { %v909_v51 = vmul.f32 %v894_v48, %v791_v19  ;;  %v910_v58 = vmul.f32 %v894_v48, %v1649_v41  ;;  %v898_v22 = vmul.f32 %v894_v48, %v1596_v57  ;;  %v899_v60 = vmul.f32 %v894_v48, %v1610_v4 }
 0x376   :  { %v911_v17 = vmul.f32 %v894_v48, %v1653_v0  ;;  %v916_v35 = vrot.slane %v889_v52, %v1482_v53 }
 0x378   :  { %v918_v13 = vadd.f32 %v916_v35, %v896_v59  ;;  %v919_v5 = vadd.f32 %v916_v35, %v897_v62  ;;  %v920_v43 = vadd.f32 %v916_v35, %v898_v22  ;;  %v921_v24 = vadd.f32 %v916_v35, %v899_v60 }
 0x379   :  { %v922_v29 = vadd.f32 %v916_v35, %v900_v3  ;;  %v923_v55 = vadd.f32 %v916_v35, %v901_v6  ;;  %v924_v50 = vadd.f32 %v916_v35, %v902_v7  ;;  %v925_v54 = vadd.f32 %v916_v35, %v903_v8 }
 0x37a   :  { %v926_v19 = vadd.f32 %v916_v35, %v904_v23  ;;  %v927_v63 = vadd.f32 %v916_v35, %v905_v28  ;;  %v928_v41 = vadd.f32 %v916_v35, %v906_v42  ;;  %v929_v25 = vadd.f32 %v916_v35, %v907_v18 }
 0x37b   :  { %v930_v57 = vadd.f32 %v916_v35, %v908_v37  ;;  %v931_v26 = vadd.f32 %v916_v35, %v909_v51  ;;  %v932_v4 = vadd.f32 %v916_v35, %v910_v58  ;;  %v933_v27 = vadd.f32 %v916_v35, %v911_v17 }
 0x37c   :  { %vm935_vm0 = vcmp.gt.f32.partialorder %v918_v13, 0.0  ;;  %vm936_vm1 = vcmp.gt.f32.partialorder %v919_v5, 0.0  ;;  %vm937_vm2 = vcmp.gt.f32.partialorder %v920_v43, 0.0  ;;  %vm938_vm3 = vcmp.gt.f32.partialorder %v921_v24, 0.0 }
 0x37d   :  { %vm939_vm4 = vcmp.gt.f32.partialorder %v922_v29, 0.0  ;;  %vm940_vm5 = vcmp.gt.f32.partialorder %v923_v55, 0.0  ;;  %vm941_vm6 = vcmp.gt.f32.partialorder %v924_v50, 0.0  ;;  %vm942_vm7 = vcmp.gt.f32.partialorder %v925_v54, 0.0 }
 0x37e   :  { %vm943_vm8 = vcmp.gt.f32.partialorder %v926_v19, 0.0  ;;  %vm944_vm9 = vcmp.gt.f32.partialorder %v927_v63, 0.0  ;;  %vm945_vm10 = vcmp.gt.f32.partialorder %v928_v41, 0.0  ;;  %vm946_vm11 = vcmp.gt.f32.partialorder %v929_v25, 0.0 }
 0x37f   :  { %vm947_vm12 = vcmp.gt.f32.partialorder %v930_v57, 0.0  ;;  %vm948_vm13 = vcmp.gt.f32.partialorder %v931_v26, 0.0  ;;  %vm949_vm14 = vcmp.gt.f32.partialorder %v932_v4, 0.0  ;;  %vm950_vm15 = vcmp.gt.f32.partialorder %v933_v27, 0.0 }
 0x380   :  { %v952_v53 = vmul.f32 %v951_v20, %v918_v13  ;;  %v953_v0 = vmul.f32 %v951_v20, %v919_v5  ;;  %v954_v32 = vmul.f32 %v951_v20, %v920_v43  ;;  %v955_v36 = vmul.f32 %v951_v20, %v921_v24 }
 0x381   :  { %v956_v30 = vmul.f32 %v951_v20, %v922_v29  ;;  %v957_v9 = vmul.f32 %v951_v20, %v923_v55  ;;  %v958_v45 = vmul.f32 %v951_v20, %v924_v50  ;;  %v959_v10 = vmul.f32 %v951_v20, %v925_v54 }
 0x382   :  { %v960_v11 = vmul.f32 %v951_v20, %v926_v19  ;;  %v961_v12 = vmul.f32 %v951_v20, %v927_v63  ;;  %v962_v14 = vmul.f32 %v951_v20, %v928_v41  ;;  %v963_v49 = vmul.f32 %v951_v20, %v929_v25 }
 0x383   :  { %v964_v15 = vmul.f32 %v951_v20, %v930_v57  ;;  %v965_v1 = vmul.f32 %v951_v20, %v931_v26  ;;  %v966_v21 = vmul.f32 %v951_v20, %v932_v4  ;;  %v967_v40 = vmul.f32 %v951_v20, %v933_v27 }
 0x384   :  { %v968_v56 = vsel %vm935_vm0, %v918_v13, %v952_v53  ;;  %v969_v2 = vsel %vm936_vm1, %v919_v5, %v953_v0  ;;  %v970_v16 = vsel %vm937_vm2, %v920_v43, %v954_v32  ;;  %v971_v61 = vsel %vm938_vm3, %v921_v24, %v955_v36 }
 0x385   :  { %v972_v47 = vsel %vm939_vm4, %v922_v29, %v956_v30  ;;  %v973_v31 = vsel %vm940_vm5, %v923_v55, %v957_v9  ;;  %v974_v33 = vsel %vm941_vm6, %v924_v50, %v958_v45  ;;  %v975_v34 = vsel %vm942_vm7, %v925_v54, %v959_v10  ;;  %984 = vst [vmem:[%s1752_s8] sm:$0xff] %v968_v56 }
 0x386   :  { %985 = vst [vmem:[%s1752_s8 + $0x8] sm:$0xff] %v969_v2  ;;  %986 = vst [vmem:[%s1752_s8 + $0x10] sm:$0xff] %v970_v16  ;;  %v976_v38 = vsel %vm943_vm8, %v926_v19, %v960_v11  ;;  %v977_v39 = vsel %vm944_vm9, %v927_v63, %v961_v12  ;;  %v978_v44 = vsel %vm945_vm10, %v928_v41, %v962_v14 }
 0x387   :  { %987 = vst [vmem:[%s1752_s8 + $0x18] sm:$0xff] %v971_v61  ;;  %v979_v46 = vsel %vm946_vm11, %v929_v25, %v963_v49  ;;  %988 = vst [vmem:[%s1752_s8 + $0x20] sm:$0xff] %v972_v47  ;;  %v980_v48 = vsel %vm947_vm12, %v930_v57, %v964_v15  ;;  %v981_v52 = vsel %vm948_vm13, %v931_v26, %v965_v1 }
 0x388   :  { %989 = vst [vmem:[%s1752_s8 + $0x28] sm:$0xff] %v973_v31  ;;  %990 = vst [vmem:[%s1752_s8 + $0x30] sm:$0xff] %v974_v33  ;;  %v982_v59 = vsel %vm949_vm14, %v932_v4, %v966_v21  ;;  %v983_v62 = vsel %vm950_vm15, %v933_v27, %v967_v40 }
 0x389   :  { %991 = vst [vmem:[%s1752_s8 + $0x38] sm:$0xff] %v975_v34  ;;  %992 = vst [vmem:[%s1752_s8 + $0x40] sm:$0xff] %v976_v38 }
 0x38a   :  { %993 = vst [vmem:[%s1752_s8 + $0x48] sm:$0xff] %v977_v39  ;;  %994 = vst [vmem:[%s1752_s8 + $0x50] sm:$0xff] %v978_v44 }
 0x38b   :  { %995 = vst [vmem:[%s1752_s8 + $0x58] sm:$0xff] %v979_v46  ;;  %996 = vst [vmem:[%s1752_s8 + $0x60] sm:$0xff] %v980_v48 }
 0x38c   :  { %997 = vst [vmem:[%s1752_s8 + $0x68] sm:$0xff] %v981_v52  ;;  %998 = vst [vmem:[%s1752_s8 + $0x70] sm:$0xff] %v982_v59 }
 0x38d   :  { %999 = vst [vmem:[%s1752_s8 + $0x78] sm:$0xff] %v983_v62 }
 0x38e   :  { %1004 = vsyncpa [#allocation3], 1 }

</bundles_post_ra>
